<compile_context>
chip_gen: v7x
topology: tpu7x:2x2x1
jax: 0.10.0
libtpu: 0.0.40
codegen_flags: <defaults>
</compile_context>

<pallas_src>
import math
import functools

import jax
import jax.numpy as jnp
from jax import lax
from jax.experimental import pallas as pl
from jax.experimental.pallas import tpu as pltpu


DOWN_CHANNELS = (64, 128, 256, 512, 1024)
UP_CHANNELS = (1024, 512, 256, 128, 64)
TIME_DIM = 32
IMG_CHANNELS = 1
OUT_DIM = 1  # kernel size of the final conv


# ------------------------------ helpers ------------------------------------

def _round_up(x, m):
    return ((x + m - 1) // m) * m


def _pad_dim(d, base, cap):
    """Pad dim `d` up so it is divisible by the chosen tile; return (padded, tile)."""
    p = _round_up(d, base)
    if p > cap:
        p = _round_up(d, cap)
    return p, min(p, cap)


# ---------------------- Pallas kernel: tiled matmul -------------------------

def _matmul_kernel(a_ref, b_ref, bias_ref, o_ref, acc_ref, *, apply_relu):
    k = pl.program_id(2)

    @pl.when(k == 0)
    def _():
        acc_ref[...] = jnp.zeros_like(acc_ref)

    acc_ref[...] += jnp.dot(a_ref[...], b_ref[...],
                            preferred_element_type=jnp.float32)

    @pl.when(k == pl.num_programs(2) - 1)
    def _():
        out = acc_ref[...] + bias_ref[...]
        if apply_relu:
            out = jnp.maximum(out, 0.0)
        o_ref[...] = out.astype(o_ref.dtype)


def matmul_bias_act(a, b, bias, *, relu=False):
    """(M,K) @ (K,N) + bias[N], optional fused ReLU, f32 accumulate on the MXU."""
    M, K = a.shape
    K2, N = b.shape
    assert K == K2
    Mp, tm = _pad_dim(M, 8, 256)
    Np, tn = _pad_dim(N, 128, 256)
    Kp, tk = _pad_dim(K, 128, 512)
    a_p = jnp.pad(a.astype(jnp.float32), ((0, Mp - M), (0, Kp - K)))
    b_p = jnp.pad(b.astype(jnp.float32), ((0, Kp - K), (0, Np - N)))
    bias_p = jnp.pad(bias.astype(jnp.float32), (0, Np - N)).reshape(1, Np)

    out = pl.pallas_call(
        functools.partial(_matmul_kernel, apply_relu=relu),
        out_shape=jax.ShapeDtypeStruct((Mp, Np), jnp.float32),
        grid_spec=pltpu.PrefetchScalarGridSpec(
            num_scalar_prefetch=0,
            grid=(Mp // tm, Np // tn, Kp // tk),
            in_specs=[
                pl.BlockSpec((tm, tk), lambda i, j, k: (i, k)),
                pl.BlockSpec((tk, tn), lambda i, j, k: (k, j)),
                pl.BlockSpec((1, tn), lambda i, j, k: (0, j)),
            ],
            out_specs=pl.BlockSpec((tm, tn), lambda i, j, k: (i, j)),
            scratch_shapes=[pltpu.VMEM((tm, tn), jnp.float32)],
        ),
        compiler_params=pltpu.CompilerParams(
            dimension_semantics=("parallel", "parallel", "arbitrary")),
    )(a_p, b_p, bias_p)
    return out[:M, :N]


# --------- Pallas kernel: fused sinusoidal embedding + Linear + ReLU --------

def _time_mlp_kernel(t_ref, f_ref, ws_ref, wc_ref, b_ref, o_ref):
    # emb = time * freqs; out = relu(sin(emb) @ W_sin + cos(emb) @ W_cos + b).
    # Splitting the weight into sin/cos row-halves removes the lane-axis
    # concatenation of the original module.
    emb = t_ref[...] * f_ref[...]                         # (Bp,1)*(1,Hp)->(Bp,Hp)
    out = (jnp.dot(jnp.sin(emb), ws_ref[...], preferred_element_type=jnp.float32)
           + jnp.dot(jnp.cos(emb), wc_ref[...], preferred_element_type=jnp.float32)
           + b_ref[...])
    o_ref[...] = jnp.maximum(out, 0.0)


def time_mlp_fused(time, w, b, dim):
    """time: [B] -> ReLU(Linear(SinusoidalPositionEmbedding(dim)(time)))  [B, dim]."""
    assert dim % 2 == 0 and dim > 2, "dim must be even and > 2"
    B = time.shape[0]
    half = dim // 2
    scale = math.log(10000.0) / (half - 1)
    freqs = jnp.exp(jnp.arange(half, dtype=jnp.float32) * -scale)  # hoisted out of kernel
    w_t = w.astype(jnp.float32).T                                  # [in, out]

    # Pad to (8,128)-aligned single blocks.  Padded freq lanes are 0, so
    # cos(0)=1 there, but the matching rows of the padded cos-weight are 0,
    # so padded lanes contribute nothing.  Padded batch rows are sliced off.
    Bp = _round_up(B, 8)
    Hp = _round_up(half, 128)
    Dp = _round_up(dim, 128)
    t_p = jnp.pad(time.astype(jnp.float32).reshape(B, 1), ((0, Bp - B), (0, 0)))
    f_p = jnp.pad(freqs.reshape(1, half), ((0, 0), (0, Hp - half)))
    ws_p = jnp.pad(w_t[:half], ((0, Hp - half), (0, Dp - dim)))
    wc_p = jnp.pad(w_t[half:], ((0, Hp - half), (0, Dp - dim)))
    b_p = jnp.pad(b.astype(jnp.float32).reshape(1, dim), ((0, 0), (0, Dp - dim)))

    out = pl.pallas_call(                     # single invocation, no grid
        _time_mlp_kernel,
        out_shape=jax.ShapeDtypeStruct((Bp, Dp), jnp.float32),
    )(t_p, f_p, ws_p, wc_p, b_p)
    return out[:B, :dim]


# ------------------- conv layers lowered onto the Pallas matmul -------------

def _im2col(x, kh, kw, stride, padding):
    B, C, H, W = x.shape
    xp = jnp.pad(x, ((0, 0), (0, 0), (padding, padding), (padding, padding)))
    Ho = (H + 2 * padding - kh) // stride + 1
    Wo = (W + 2 * padding - kw) // stride + 1
    cols = []
    for i in range(kh):
        for j in range(kw):
            cols.append(xp[:, :, i:i + stride * Ho:stride, j:j + stride * Wo:stride])
    patches = jnp.stack(cols, axis=2)                       # [B, C, kh*kw, Ho, Wo]
    patches = patches.transpose(0, 3, 4, 1, 2).reshape(B * Ho * Wo, C * kh * kw)
    return patches, Ho, Wo


def conv2d(x, weight, bias, *, stride=1, padding=0, relu=False):
    """NCHW Conv2d via im2col + Pallas matmul.  weight: [O, C, kh, kw] (PyTorch)."""
    B, C, H, W = x.shape
    O, _, kh, kw = weight.shape
    patches, Ho, Wo = _im2col(x, kh, kw, stride, padding)
    w_mat = weight.transpose(1, 2, 3, 0).reshape(C * kh * kw, O)
    y = matmul_bias_act(patches, w_mat, bias, relu=relu)
    return y.reshape(B, Ho, Wo, O).transpose(0, 3, 1, 2)


def conv_transpose2d(x, weight, bias, *, stride=2, padding=1):
    """NCHW ConvTranspose2d via zero-dilation + flipped-kernel stride-1 conv.
    weight: [C_in, C_out, kh, kw] (PyTorch ConvTranspose2d layout)."""
    B, C, H, W = x.shape
    _, O, kh, kw = weight.shape
    if stride > 1:
        xd = jnp.zeros((B, C, (H - 1) * stride + 1, (W - 1) * stride + 1), x.dtype)
        xd = xd.at[:, :, ::stride, ::stride].set(x)
    else:
        xd = x
    pad = kh - 1 - padding
    xd = jnp.pad(xd, ((0, 0), (0, 0), (pad, pad), (pad, pad)))
    w_conv = weight[:, :, ::-1, ::-1].transpose(1, 0, 2, 3)     # [O, C, kh, kw]
    return conv2d(xd, w_conv, bias, stride=1, padding=0)


def batchnorm2d(x, eps=1e-5):
    # TODO(synk): batch-statistics reduction + normalize left to XLA (memory-bound
    # elementwise, no Pallas win at these sizes); gamma=1, beta=0 as at PyTorch init.
    mean = jnp.mean(x, axis=(0, 2, 3), keepdims=True)
    var = jnp.var(x, axis=(0, 2, 3), keepdims=True)
    return (x - mean) * lax.rsqrt(var + eps)


# --------------------------- SimpleUNET forward -----------------------------

def block_forward(p, x, t, *, up):
    h = conv2d(x, p["conv1_w"], p["conv1_b"], stride=1, padding=1, relu=True)
    h = batchnorm2d(h)
    te = matmul_bias_act(t, p["time_w"].T, p["time_b"], relu=True)    # [B, out_ch]
    h = h + te[:, :, None, None]
    h = conv2d(h, p["conv2_w"], p["conv2_b"], stride=1, padding=1, relu=True)
    h = batchnorm2d(h)
    if up:
        return conv_transpose2d(h, p["tr_w"], p["tr_b"], stride=2, padding=1)
    return conv2d(h, p["tr_w"], p["tr_b"], stride=2, padding=1)


def simple_unet_forward(params, x, timestep):
    t = time_mlp_fused(timestep, params["time_w"], params["time_b"], TIME_DIM)
    x = conv2d(x, params["conv0_w"], params["conv0_b"], stride=1, padding=1)
    residuals = []
    for p in params["downs"]:
        x = block_forward(p, x, t, up=False)
        residuals.append(x)
    for p in params["ups"]:
        r = residuals.pop()
        x = jnp.concatenate([x, r], axis=1)
        x = block_forward(p, x, t, up=True)
    return conv2d(x, params["out_w"], params["out_b"], stride=1, padding=0)


# ------------------------------ parameters ----------------------------------

def init_params(key):
    keys = iter(jax.random.split(key, 256))

    def nrm(shape, fan_in):
        return jax.random.normal(next(keys), shape, jnp.float32) / math.sqrt(fan_in)

    def block_params(in_ch, out_ch, up):
        c1_in = 2 * in_ch if up else in_ch
        return {
            "time_w": nrm((out_ch, TIME_DIM), TIME_DIM),
            "time_b": nrm((out_ch,), TIME_DIM),
            "conv1_w": nrm((out_ch, c1_in, 3, 3), c1_in * 9),
            "conv1_b": nrm((out_ch,), c1_in * 9),
            "conv2_w": nrm((out_ch, out_ch, 3, 3), out_ch * 9),
            "conv2_b": nrm((out_ch,), out_ch * 9),
            # down: Conv2d layout [out,in,4,4]; up: ConvTranspose2d layout [in,out,4,4]
            # (same shape here since in_ch == out_ch for the transform).
            "tr_w": nrm((out_ch, out_ch, 4, 4), out_ch * 16),
            "tr_b": nrm((out_ch,), out_ch * 16),
        }

    return {
        "time_w": nrm((TIME_DIM, TIME_DIM), TIME_DIM),
        "time_b": nrm((TIME_DIM,), TIME_DIM),
        "conv0_w": nrm((DOWN_CHANNELS[0], IMG_CHANNELS, 3, 3), IMG_CHANNELS * 9),
        "conv0_b": nrm((DOWN_CHANNELS[0],), IMG_CHANNELS * 9),
        "downs": [block_params(DOWN_CHANNELS[i], DOWN_CHANNELS[i + 1], up=False)
                  for i in range(len(DOWN_CHANNELS) - 1)],
        "ups": [block_params(UP_CHANNELS[i], UP_CHANNELS[i + 1], up=True)
                for i in range(len(UP_CHANNELS) - 1)],
        "out_w": nrm((3, UP_CHANNELS[-1], OUT_DIM, OUT_DIM), UP_CHANNELS[-1]),
        "out_b": nrm((3,), UP_CHANNELS[-1]),
    }


# --------------------------------- main --------------------------------------

if __name__ == "__main__":
    key = jax.random.PRNGKey(0)
    kp, kx, kt = jax.random.split(key, 3)
    params = init_params(kp)

    B, H, W = 2, 16, 16
    x = jax.random.normal(kx, (B, IMG_CHANNELS, H, W), jnp.float32)
    timestep = jax.random.uniform(kt, (B,), jnp.float32, 0.0, 1000.0)

    # --- self-check: fused time-MLP kernel vs pure-jnp reference ------------
    t_out = jax.block_until_ready(
        time_mlp_fused(timestep, params["time_w"], params["time_b"], TIME_DIM))
    half = TIME_DIM // 2
    scale = math.log(10000.0) / (half - 1)
    freqs = jnp.exp(jnp.arange(half, dtype=jnp.float32) * -scale)
    emb = timestep[:, None] * freqs[None, :]
    emb = jnp.concatenate([jnp.sin(emb), jnp.cos(emb)], axis=-1)
    t_ref = jnp.maximum(
        jnp.dot(emb, params["time_w"].T, precision=lax.Precision.HIGHEST)
        + params["time_b"], 0.0)
    assert jnp.allclose(t_out, t_ref, atol=1e-3, rtol=1e-3)

    # --- self-check: tiled matmul kernel vs pure-jnp reference --------------
    ka, kb = jax.random.split(kx)
    a = jax.random.normal(ka, (7, 37), jnp.float32)
    bmat = jax.random.normal(kb, (37, 9), jnp.float32)
    bias = jnp.arange(9, dtype=jnp.float32)
    mm = jax.block_until_ready(matmul_bias_act(a, bmat, bias, relu=True))
    mm_ref = jnp.maximum(
        jnp.dot(a, bmat, precision=lax.Precision.HIGHEST) + bias, 0.0)
    assert jnp.allclose(mm, mm_ref, atol=1e-3, rtol=1e-3)

    # --- full SimpleUNET forward ---------------------------------------------
    fwd = jax.jit(simple_unet_forward)
    out = jax.block_until_ready(fwd(params, x, timestep))

    assert out.shape == (B, 3, H, W), out.shape
    assert bool(jnp.all(jnp.isfinite(out)))

    print("KERNEL_OK")
</pallas_src>

<mosaic_0001>
module attributes {stable_mosaic.version = 11 : i64} {
  func.func @_time_mlp_kernel(%arg0: memref<8x1xf32, #tpu.memory_space<vmem>>, %arg1: memref<1x128xf32, #tpu.memory_space<vmem>>, %arg2: memref<128x128xf32, #tpu.memory_space<vmem>>, %arg3: memref<128x128xf32, #tpu.memory_space<vmem>>, %arg4: memref<1x128xf32, #tpu.memory_space<vmem>>, %arg5: memref<8x128xf32, #tpu.memory_space<vmem>>) attributes {dimension_semantics = [], scalar_prefetch = 0 : i64, scratch_operands = 0 : i64, tpu.core_type = #tpu.core_type<tc>} {
    %c0 = arith.constant 0 : index
    %c0_0 = arith.constant 0 : index
    %0 = vector.load %arg0[%c0, %c0_0] : memref<8x1xf32, #tpu.memory_space<vmem>>, vector<8x1xf32>
    %c0_1 = arith.constant 0 : index
    %c0_2 = arith.constant 0 : index
    %1 = vector.load %arg1[%c0_1, %c0_2] : memref<1x128xf32, #tpu.memory_space<vmem>>, vector<1x128xf32>
    %2 = vector.broadcast %0 : vector<8x1xf32> to vector<8x128xf32>
    %3 = vector.broadcast %1 : vector<1x128xf32> to vector<8x128xf32>
    %4 = arith.mulf %2, %3 : vector<8x128xf32>
    %5 = math.sin %4 : vector<8x128xf32>
    %c0_3 = arith.constant 0 : index
    %c0_4 = arith.constant 0 : index
    %6 = vector.load %arg2[%c0_3, %c0_4] : memref<128x128xf32, #tpu.memory_space<vmem>>, vector<128x128xf32>
    %cst = arith.constant dense<0.000000e+00> : vector<8x128xf32>
    %7 = tpu.matmul %5, %6, %cst {dimension_numbers = #tpu.dot_dimension_numbers<[1], [0], [0], [1], [0, 0, 1, 1], [], []>} : vector<8x128xf32>, vector<128x128xf32>, vector<8x128xf32> -> vector<8x128xf32>
    %8 = math.cos %4 : vector<8x128xf32>
    %c0_5 = arith.constant 0 : index
    %c0_6 = arith.constant 0 : index
    %9 = vector.load %arg3[%c0_5, %c0_6] : memref<128x128xf32, #tpu.memory_space<vmem>>, vector<128x128xf32>
    %cst_7 = arith.constant dense<0.000000e+00> : vector<8x128xf32>
    %10 = tpu.matmul %8, %9, %cst_7 {dimension_numbers = #tpu.dot_dimension_numbers<[1], [0], [0], [1], [0, 0, 1, 1], [], []>} : vector<8x128xf32>, vector<128x128xf32>, vector<8x128xf32> -> vector<8x128xf32>
    %11 = arith.addf %7, %10 : vector<8x128xf32>
    %c0_8 = arith.constant 0 : index
    %c0_9 = arith.constant 0 : index
    %12 = vector.load %arg4[%c0_8, %c0_9] : memref<1x128xf32, #tpu.memory_space<vmem>>, vector<1x128xf32>
    %13 = vector.broadcast %12 : vector<1x128xf32> to vector<8x128xf32>
    %14 = arith.addf %11, %13 : vector<8x128xf32>
    %cst_10 = arith.constant 0.000000e+00 : f32
    %15 = vector.broadcast %cst_10 : f32 to vector<8x128xf32>
    %16 = arith.maximumf %14, %15 : vector<8x128xf32>
    %c0_11 = arith.constant 0 : index
    %c0_12 = arith.constant 0 : index
    %17 = vector.load %arg5[%c0_11, %c0_12] : memref<8x128xf32, #tpu.memory_space<vmem>>, vector<8x128xf32>
    tpu.vector_store %arg5[%c0_11, %c0_12], %16 {strides = array<i32>} : memref<8x128xf32, #tpu.memory_space<vmem>>, vector<8x128xf32>,
    return
  }
}

</mosaic_0001>

<bundles_post_ra>
// kernel: tpu_custom_call.1
= control target key start
LH: loop header
LB: loop body
LE: loop exit
PB: predicated region body
PF: predicated region fallthrough
CT: control target
= control target key end

     0   :  { %10 = vsyncpa [#allocation3], 0  ;;  %s853_s0 = inlined_call_operand.vmem [shape: f32[8,1], index: 0, kind: input, shape index: {}]   ;;  %s854_s1 = inlined_call_operand.vmem [shape: f32[1,128], index: 1, kind: input, shape index: {}]   ;;  %s855_s2 = inlined_call_operand.hbm [shape: f32[128,128], index: 2, kind: input, shape index: {}]   ;;  %s856_s3 = inlined_call_operand.hbm [shape: f32[128,128], index: 3, kind: input, shape index: {}]   ;;  %s857_s4 = inlined_call_operand.vmem [shape: f32[1,128], index: 4, kind: input, shape index: {}]   ;;  %s858_s5 = inlined_call_operand.hbm [shape: f32[8,128], index: 5, kind: output, shape index: {}]  }
   0x1   :  { %11 = vsyncpa [#allocation6], 0 }
   0x2   :  { %12 = vsyncpa [#allocation4], 0  ;;  %s726_s18 = smov [#allocation2]   ;;  %s654_s22 = scalar_lea.hbm %s855_s2, 2048 }
   0x3   :  { %s22_s19 = sshll.u32 %s726_s18, 4  ;;  %p655_p0 = scmp.ne.s32.totalorder %s855_s2, %s654_s22  ;;  %s23_s19 = int_to_ptr.vmem [resolvable:$true] %s22_s19 }
   0x4   :  { %p658_p1 = scmp.lt.u32.totalorder %s654_s22, %s855_s2 }
   0x6   :  { %p660_p2 = pnand %p658_p1, %p655_p0 }
   0x8   :  { %663 = shalt.err (!%p660_p2)
}
   0x9   :  { %s664_s27 = scalar_lea.vmem %s23_s19, 2048  ;;  %p669_p4 = scmp.lt.s32.totalorder %s23_s19, %s23_s19 }
   0xa   :  { %p665_p3 = scmp.ne.s32.totalorder %s23_s19, %s664_s27  ;;  %p670_p5 = scmp.lt.s32.totalorder %s664_s27, %s664_s27 }
   0xc   :  { %p671_p6 = por %p670_p5, %p669_p4 }
   0xe   :  { %p672_p7 = pnand %p671_p6, %p665_p3 }
  0x10   :  { %675 = shalt.err (!%p672_p7)
}
  0x11   :  { %s727_s28 = smov 128   ;;  %s728_s29 = smov 8  }
  0x12   :  { %28 = dma.hbm_to_vmem [thread:$0]  %s855_s2, 2048, %s23_s19, [#allocation3], %s727_s28, %s727_s28, %s728_s29  }
  0x13   :  { %s729_s7 = smov [#allocation5]   ;;  %s676_s11 = scalar_lea.hbm %s856_s3, 2048 }
  0x14   :  { %s34_s8 = sshll.u32 %s729_s7, 4  ;;  %p677_p8 = scmp.ne.s32.totalorder %s856_s3, %s676_s11  ;;  %s35_s8 = int_to_ptr.vmem [resolvable:$true] %s34_s8 }
  0x15   :  { %p680_p9 = scmp.lt.u32.totalorder %s676_s11, %s856_s3 }
  0x17   :  { %p682_p10 = pnand %p680_p9, %p677_p8 }
  0x19   :  { %685 = shalt.err (!%p682_p10)
}
  0x1a   :  { %s686_s16 = scalar_lea.vmem %s35_s8, 2048  ;;  %p691_p12 = scmp.lt.s32.totalorder %s35_s8, %s35_s8 }
  0x1b   :  { %p687_p11 = scmp.ne.s32.totalorder %s35_s8, %s686_s16  ;;  %p692_p13 = scmp.lt.s32.totalorder %s686_s16, %s686_s16 }
  0x1d   :  { %p693_p0 = por %p692_p13, %p691_p12 }
  0x1f   :  { %p694_p1 = pnand %p693_p0, %p687_p11 }
  0x21   :  { %697 = shalt.err (!%p694_p1)
}
  0x22   :  { %40 = dma.hbm_to_vmem [thread:$0]  %s856_s3, 2048, %s35_s8, [#allocation6], %s727_s28, %s727_s28, %s728_s29  }
  0x23   :  { %720 = dma.done.wait [#allocation3], 2048  }
  0x24   :  { %721 = vsyncadd [#allocation3], 4294965248 }
  0x25   :  { %722 = dma.done.wait [#allocation6], 2048  }
  0x26   :  { %723 = vsyncadd [#allocation6], 4294965248  ;;  %v730_v0 = vmov 0   ;;  %v49_v1 = vld [vmem:[%s853_s0] sm:$0xff]  ;;  %v287_v3 = vld [vmem:[#allocation5 + $0x8] sm:$0xff]  ;;  %v731_v7 = vmov 0.0|0.0  }
  0x27   :  { %649 = vset.pattern.permute.xlu0 %v730_v0  ;;  %v286_v2 = vld [vmem:[#allocation5] sm:$0xff]  ;;  %v168_v6 = vld [vmem:[#allocation2 + $0x8] sm:$0xff]  ;;  %582 = vmatprep.subr.bf16.mxu0 %v731_v7  ;;  %v288_v9 = vld [vmem:[#allocation5 + $0x10] sm:$0xff]  ;;  %vm732_vm0 = vmmov 0   ;;  %v733_v32 = vmov 0.0   ;;  %s740_s21 = smov [#allocation7]  }
  0x28   :  { %53 = vperm.xlu0 %649, %v49_v1   ;;  %v167_v4 = vld [vmem:[#allocation2] sm:$0xff]  ;;  %v583_v5 = vpack.c.bf16 %v287_v3, %v286_v2  ;;  %606 = vmatprep.subr.bf16.mxu1 %v731_v7  ;;  %v289_v10 = vld [vmem:[#allocation5 + $0x18] sm:$0xff]  ;;  %v169_v11 = vld [vmem:[#allocation2 + $0x10] sm:$0xff]  ;;  %v734_v1 = vmov 683565275   ;;  %s458_s22 = sshll.u32 %s740_s21, 4  ;;  %s459_s22 = int_to_ptr.vmem [resolvable:$true] %s458_s22 }
  0x29   :  { %v607_v8 = vpack.c.bf16 %v168_v6, %v167_v4  ;;  %v586_v12 = vpack.c.bf16 %v289_v10, %v288_v9  ;;  %v170_v13 = vld [vmem:[#allocation2 + $0x18] sm:$0xff]  ;;  %v290_v15 = vld [vmem:[#allocation5 + $0x20] sm:$0xff]  ;;  %v291_v16 = vld [vmem:[#allocation5 + $0x28] sm:$0xff]  ;;  %544 = vmatprep.mubr.msk.f32.mxu0 %vm732_vm0, %v733_v32  ;;  %579 = vmatprep.mubr.msk.f32.mxu1 %vm732_vm0, %v733_v32  ;;  %v735_v3 = vmov 2475754826   ;;  %s698_s23 = scalar_lea.vmem %s459_s22, 128  ;;  %p703_p3 = scmp.lt.s32.totalorder %s459_s22, %s459_s22 }
  0x2a   :  { %584 = vmatpush3.bf16.msra.mxu0 %v583_v5  ;;  %v610_v14 = vpack.c.bf16 %v170_v13, %v169_v11  ;;  %v171_v17 = vld [vmem:[#allocation2 + $0x20] sm:$0xff]  ;;  %v589_v18 = vpack.c.bf16 %v291_v16, %v290_v15  ;;  %v172_v19 = vld [vmem:[#allocation2 + $0x28] sm:$0xff]  ;;  %v292_v21 = vld [vmem:[#allocation5 + $0x30] sm:$0xff]  ;;  %v736_v6 = vmov 2131351028   ;;  %p699_p2 = scmp.ne.s32.totalorder %s459_s22, %s698_s23  ;;  %p704_p4 = scmp.lt.s32.totalorder %s698_s23, %s698_s23 }
  0x2b   :  { %608 = vmatpush3.bf16.msra.mxu1 %v607_v8  ;;  %585 = vmatprep.subr.bf16.mxu0 %v731_v7  ;;  %v613_v20 = vpack.c.bf16 %v172_v19, %v171_v17  ;;  %v293_v22 = vld [vmem:[#allocation5 + $0x38] sm:$0xff]  ;;  %v173_v23 = vld [vmem:[#allocation2 + $0x30] sm:$0xff]  ;;  %v294_v27 = vld [vmem:[#allocation5 + $0x40] sm:$0xff]  ;;  %v737_v9 = vmov 2102212464  }
  0x2c   :  { %609 = vmatprep.subr.bf16.mxu1 %v731_v7  ;;  %v592_v24 = vpack.c.bf16 %v293_v22, %v292_v21  ;;  %v174_v25 = vld [vmem:[#allocation2 + $0x38] sm:$0xff]  ;;  %v295_v28 = vld [vmem:[#allocation5 + $0x48] sm:$0xff]  ;;  %v175_v29 = vld [vmem:[#allocation2 + $0x40] sm:$0xff]  ;;  %v739_v15 = vmov 1326507024   ;;  %p705_p5 = por %p704_p4, %p703_p3 }
  0x2d   :  { %v616_v26 = vpack.c.bf16 %v174_v25, %v173_v23  ;;  %v595_v30 = vpack.c.bf16 %v295_v28, %v294_v27  ;;  %v176_v31 = vld [vmem:[#allocation2 + $0x48] sm:$0xff]  ;;  %v296_v34 = vld [vmem:[#allocation5 + $0x50] sm:$0xff]  ;;  %v297_v35 = vld [vmem:[#allocation5 + $0x58] sm:$0xff] }
  0x2e   :  { %587 = vmatpush3.bf16.msra.mxu0 %v586_v12  ;;  %v619_v33 = vpack.c.bf16 %v176_v31, %v175_v29  ;;  %v177_v36 = vld [vmem:[#allocation2 + $0x50] sm:$0xff]  ;;  %v178_v37 = vld [vmem:[#allocation2 + $0x58] sm:$0xff]  ;;  %v598_v38 = vpack.c.bf16 %v297_v35, %v296_v34  ;;  %v298_v40 = vld [vmem:[#allocation5 + $0x60] sm:$0xff]  ;;  %v738_v12 = vmov 920167782   ;;  %p706_p6 = pnand %p705_p5, %p699_p2 }
  0x2f   :  { %611 = vmatpush3.bf16.msra.mxu1 %v610_v14  ;;  %588 = vmatprep.subr.bf16.mxu0 %v731_v7  ;;  %v622_v39 = vpack.c.bf16 %v178_v37, %v177_v36  ;;  %v299_v41 = vld [vmem:[#allocation5 + $0x68] sm:$0xff]  ;;  %v179_v42 = vld [vmem:[#allocation2 + $0x60] sm:$0xff]  ;;  %v300_v46 = vld [vmem:[#allocation5 + $0x70] sm:$0xff] }
  0x30   :  { %612 = vmatprep.subr.bf16.mxu1 %v731_v7  ;;  %v180_v43 = vld [vmem:[#allocation2 + $0x68] sm:$0xff]  ;;  %v601_v44 = vpack.c.bf16 %v299_v41, %v298_v40  ;;  %v301_v47 = vld [vmem:[#allocation5 + $0x78] sm:$0xff]  ;;  %v181_v48 = vld [vmem:[#allocation2 + $0x70] sm:$0xff] }
  0x31   :  { %v625_v45 = vpack.c.bf16 %v180_v43, %v179_v42  ;;  %v182_v49 = vld [vmem:[#allocation2 + $0x78] sm:$0xff]  ;;  %v604_v50 = vpack.c.bf16 %v301_v47, %v300_v46  ;;  %v468_v52 = vld [vmem:[%s854_s1] ss:$0 sm:$0xff] }
  0x32   :  { %590 = vmatpush3.bf16.msra.mxu0 %v589_v18  ;;  %v628_v51 = vpack.c.bf16 %v182_v49, %v181_v48 }
  0x33   :  { %614 = vmatpush3.bf16.msra.mxu1 %v613_v20  ;;  %591 = vmatprep.subr.bf16.mxu0 %v731_v7 }
  0x34   :  { %615 = vmatprep.subr.bf16.mxu1 %v731_v7 }
  0x36   :  { %593 = vmatpush3.bf16.msra.mxu0 %v592_v24 }
  0x37   :  { %617 = vmatpush3.bf16.msra.mxu1 %v616_v26  ;;  %594 = vmatprep.subr.bf16.mxu0 %v731_v7 }
  0x38   :  { %618 = vmatprep.subr.bf16.mxu1 %v731_v7 }
  0x3a   :  { %596 = vmatpush3.bf16.msra.mxu0 %v595_v30 }
  0x3b   :  { %620 = vmatpush3.bf16.msra.mxu1 %v619_v33  ;;  %597 = vmatprep.subr.bf16.mxu0 %v731_v7 }
  0x3c   :  { %621 = vmatprep.subr.bf16.mxu1 %v731_v7 }
  0x3e   :  { %599 = vmatpush3.bf16.msra.mxu0 %v598_v38 }
  0x3f   :  { %623 = vmatpush3.bf16.msra.mxu1 %v622_v39  ;;  %600 = vmatprep.subr.bf16.mxu0 %v731_v7 }
  0x40   :  { %624 = vmatprep.subr.bf16.mxu1 %v731_v7 }
  0x42   :  { %602 = vmatpush3.bf16.msra.mxu0 %v601_v44 }
  0x43   :  { %626 = vmatpush3.bf16.msra.mxu1 %v625_v45  ;;  %603 = vmatprep.subr.bf16.mxu0 %v731_v7 }
  0x44   :  { %627 = vmatprep.subr.bf16.mxu1 %v731_v7 }
  0x46   :  { %605 = vmatpush3.bf16.msra.mxu0 %v604_v50 }
  0x47   :  { %629 = vmatpush3.bf16.msra.mxu1 %v628_v51 }
  0xa7   :  { %v54_v53 = vpop.permute.xlu0 %53 }
  0xa8   :  { %v817_v54 = vmul.f32 %v468_v52, %v54_v53 }
  0xaa   :  { %v66_v55 = vand.u32 2139095040, %v817_v54  ;;  %v63_v59 = vand.u32 2147483647, %v817_v54  ;;  %vm65_vm8 = vcmp.lt.s32.totalorder %v817_v54, 0  ;;  %vm155_vm0 = vweird.f32 %v817_v54 }
  0xac   :  { %v67_v56 = vshrl.u32 %v66_v55, 23  ;;  %v70_v62 = vand.u32 8388607, %v63_v59  ;;  %vm64_vm9 = vcmp.le.f32.partialorder %v63_v59, 0.7853982 }
  0xae   :  { %v469_v57 = vadd.s32 4294967169, %v67_v56  ;;  %v71_v17 = vor.u32 8388608, %v70_v62 }
  0xb0   :  { %v73_v58 = vadd.s32 1, %v469_v57  ;;  %v111_v31 = vshll.u32 %v71_v17, 8 }
  0xb2   :  { %vm74_vm1 = vcmp.gt.s32.totalorder %v73_v58, 0 }
  0xb3   :  { %v75_v60 = vsel %vm74_vm1, %v73_v58, 0 }
  0xb4   :  { %v77_v61 = vand.u32 31, %v75_v60  ;;  %v76_v0 = vshrl.u32 %v75_v60, 5 }
  0xb6   :  { %v78_v63 = vsub.s32 32, %v77_v61  ;;  %v80_v2 = vshll.u32 %v734_v1, %v77_v61  ;;  %v83_v4 = vshll.u32 %v735_v3, %v77_v61  ;;  %v86_v8 = vshll.u32 %v736_v6, %v77_v61 }
  0xb7   :  { %v89_v11 = vshll.u32 %v737_v9, %v77_v61  ;;  %v92_v14 = vshll.u32 %v738_v12, %v77_v61  ;;  %vm95_vm2 = vcmp.lt.s32.totalorder %v76_v0, 1  ;;  %vm98_vm3 = vcmp.lt.s32.totalorder %v76_v0, 4 }
  0xb8   :  { %v81_v5 = vshrl.u32 %v735_v3, %v78_v63  ;;  %v84_v7 = vshrl.u32 %v736_v6, %v78_v63  ;;  %v87_v10 = vshrl.u32 %v737_v9, %v78_v63  ;;  %v90_v13 = vshrl.u32 %v738_v12, %v78_v63 }
  0xb9   :  { %v93_v16 = vshrl.u32 %v739_v15, %v78_v63  ;;  %v79_v26 = vshrl.u32 %v734_v1, %v78_v63  ;;  %vm97_vm4 = vcmp.lt.s32.totalorder %v76_v0, 3  ;;  %vm96_vm5 = vcmp.lt.s32.totalorder %v76_v0, 2 }
  0xba   :  { %v82_v18 = vor.u32 %v81_v5, %v80_v2  ;;  %v85_v19 = vor.u32 %v84_v7, %v83_v4  ;;  %v88_v20 = vor.u32 %v87_v10, %v86_v8  ;;  %v91_v21 = vor.u32 %v90_v13, %v89_v11 }
  0xbb   :  { %v94_v22 = vor.u32 %v93_v16, %v92_v14 }
  0xbc   :  { %v100_v23 = vsel %vm98_vm3, %v88_v20, 2102212464  ;;  %v103_v24 = vsel %vm95_vm2, %v82_v18, %v85_v19  ;;  %v107_v25 = vsel %vm95_vm2, %v85_v19, %v88_v20  ;;  %v104_v27 = vsel %vm98_vm3, %v91_v21, 920167782 }
  0xbd   :  { %v108_v28 = vsel %vm98_vm3, %v94_v22, 1326507024  ;;  %v105_v29 = vsel %vm97_vm4, %v88_v20, %v104_v27  ;;  %v99_v32 = vsel %vm95_vm2, %v79_v26, %v82_v18  ;;  %v101_v33 = vsel %vm97_vm4, %v85_v19, %v100_v23  ;;  %v477_v26 = vld [vmem:[%s857_s4] ss:$0 sm:$0xff] }
  0xbe   :  { %v109_v30 = vsel %vm97_vm4, %v91_v21, %v108_v28  ;;  %v106_v34 = vsel %vm96_vm5, %v103_v24, %v105_v29  ;;  %v102_v40 = vsel %vm96_vm5, %v99_v32, %v101_v33 }
  0xbf   :  { %v110_v35 = vsel %vm96_vm5, %v107_v25, %v109_v30  ;;  %v826_v38 = vmul.u32.u64.low %v111_v31, %v106_v34  ;;  %v827_v39 = vmul.u32.u64.high %v111_v31, %v106_v34, %v826_v38  ;;  %v118_v42 = vmul.u32 %v111_v31, %v102_v40 }
  0xc0   :  { %v823_v36 = vmul.u32.u64.low %v111_v31, %v110_v35  ;;  %v824_v37 = vmul.u32.u64.high %v111_v31, %v110_v35, %v823_v36 }
  0xc1   :  { %v121_v41 = vadd.s32 1, %v827_v39 }
  0xc2   :  { %vm120_vm6 = vc.u32 %v824_v37, %v826_v38  ;;  %v119_v55 = vadd.s32 %v826_v38, %v824_v37 }
  0xc3   :  { %v122_v43 = vsel %vm120_vm6, %v121_v41, %v827_v39 }
  0xc4   :  { %v123_v44 = vadd.s32 %v122_v43, %v118_v42 }
  0xc6   :  { %v124_v45 = vadd.s32 536870912, %v123_v44 }
  0xc8   :  { %v125_v46 = vshrl.u32 %v124_v45, 30 }
  0xca   :  { %v126_v47 = vshll.u32 %v125_v46, 30  ;;  %v149_v4 = vsub.s32 4, %v125_v46 }
  0xcc   :  { %v127_v48 = vsub.s32 %v123_v44, %v126_v47  ;;  %v150_v7 = vsel %vm65_vm8, %v149_v4, %v125_v46 }
  0xcd   :  { %v152_v9 = vsel %vm64_vm9, 0, %v150_v7 }
  0xce   :  { %v129_v49 = vsub.s32 0, %v127_v48  ;;  %v156_v10 = vadd.s32 3, %v152_v9  ;;  %v276_v11 = vand.u32 3, %v152_v9 }
  0xd0   :  { %v470_v50 = vmin.u32 %v129_v49, %v127_v48  ;;  %v157_v12 = vand.u32 3, %v156_v10  ;;  %vm281_vm10 = vcmp.eq.s32.totalorder %v276_v11, 2  ;;  %vm278_vm12 = vcmp.eq.s32.totalorder %v276_v11, 0 }
  0xd1   :  { %vm277_vm14 = vcmp.lt.s32.totalorder %v276_v11, 2 }
  0xd2   :  { %v131_v51 = vclz %v470_v50  ;;  %vm162_vm11 = vcmp.eq.s32.totalorder %v157_v12, 2  ;;  %vm159_vm13 = vcmp.eq.s32.totalorder %v157_v12, 0  ;;  %vm158_vm15 = vcmp.lt.s32.totalorder %v157_v12, 2 }
  0xd4   :  { %v471_v52 = vadd.s32 4294967294, %v131_v51 }
  0xd6   :  { %vm472_vm7 = vcmp.lt.s32.totalorder %v471_v52, 0 }
  0xd7   :  { %v134_v53 = vsel %vm472_vm7, 0, %v471_v52 }
  0xd8   :  { %v135_v56 = vsub.s32 32, %v134_v53  ;;  %v139_v57 = vsub.s32 4294967266, %v134_v53  ;;  %v136_v58 = vshll.u32 %v127_v48, %v134_v53 }
  0xda   :  { %v137_v60 = vshrl.u32 %v119_v55, %v135_v56  ;;  %v140_v61 = vadd.s32 127, %v139_v57 }
  0xdc   :  { %v138_v62 = vor.u32 %v137_v60, %v136_v58  ;;  %v141_v63 = vshll.u32 %v140_v61, 23 }
  0xde   :  { %v142_v0 = vor.u32 4788187, %v141_v63  ;;  %v145_v2 = vcvt.s32.f32 %v138_v62 }
  0xe0   :  { %v143_v1 = vand.u32 2147483647, %v142_v0 }
  0xe2   :  { %v146_v3 = vmul.f32 %v145_v2, %v143_v1 }
  0xe4   :  { %v147_v5 = vxor.u32 2147483648, %v146_v3 }
  0xe6   :  { %v148_v6 = vsel %vm65_vm8, %v147_v5, %v146_v3 }
  0xe7   :  { %v151_v8 = vsel %vm64_vm9, %v817_v54, %v148_v6 }
  0xe8   :  { %650 = vcosq.f32 %v151_v8 }
  0xe9   :  { %652 = vsinq.f32 %v151_v8 }
  0xf2   :  { %v651_v13 = vpop.eup %650 }
  0xf3   :  { %v653_v14 = vpop.eup %652  ;;  %v163_v15 = vxor.u32 2147483648, %v651_v13 }
  0xf4   :  { %v160_v16 = vxor.u32 2147483648, %v653_v14 }
  0xf5   :  { %v283_v17 = vsel %vm281_vm10, %v163_v15, %v653_v14  ;;  %v164_v18 = vsel %vm162_vm11, %v163_v15, %v653_v14 }
  0xf6   :  { %v280_v59 = vsel %vm278_vm12, %v651_v13, %v160_v16  ;;  %v161_v19 = vsel %vm159_vm13, %v651_v13, %v160_v16 }
  0xf7   :  { %v284_v20 = vsel %vm277_vm14, %v280_v59, %v283_v17  ;;  %v165_v21 = vsel %vm158_vm15, %v161_v19, %v164_v18 }
  0xf8   :  { %v285_v22 = vsel %vm155_vm0, nan, %v284_v20  ;;  %v166_v23 = vsel %vm155_vm0, nan, %v165_v21 }
  0xf9   :  { %545 = vmatmul.mubr.f32.vlgmr.msra.gmra.mrb[0].mxu0 %v285_v22  ;;  %580 = vmatmul.mubr.f32.vlgmr.msra.gmra.mrb[0].mxu1 %v166_v23 }
 0x1cc   :  { %v368_v24 = vpop.f32.mrb[0].mxu0  ;;  %v438_v25 = vpop.f32.mrb[0].mxu1 }
 0x1cd   :  { %v439_v27 = vadd.f32 %v438_v25, %v368_v24  ;;  %v546_v28 = vpop.f32.mrb[1].mxu0  ;;  %v581_v29 = vpop.f32.mrb[1].mxu1 }
 0x1cf   :  { %v449_v30 = vadd.f32 %v477_v26, %v439_v27 }
 0x1d1   :  { %v450_v31 = vmax.f32 %v449_v30, 0.0 }
 0x1d3   :  { %451 = vst [vmem:[#allocation7] sm:$0xff] %v450_v31 }
 0x1d4   :  { %709 = shalt.err (!%p706_p6)
}
 0x1d5   :  { %s710_s4 = scalar_lea.hbm %s858_s5, 128 }
 0x1d6   :  { %p711_p7 = scmp.ne.s32.totalorder %s858_s5, %s710_s4  ;;  %p714_p8 = scmp.lt.u32.totalorder %s710_s4, %s858_s5 }
 0x1d8   :  { %p716_p9 = pnand %p714_p8, %p711_p7 }
 0x1da   :  { %719 = shalt.err (!%p716_p9)
}
 0x1db   :  { %461 = dma.vmem_to_hbm [thread:$0]  %s459_s22, 128, %s858_s5, [#allocation4]  }
 0x1dc   :  { %724 = dma.done.wait [#allocation4], 128  }
 0x1dd   :  { %725 = vsyncadd [#allocation4], 4294967168 }
 0x1de   :  { %465 = vsyncpa [#allocation3], 1 }
 0x1df   :  { %466 = vsyncpa [#allocation6], 1 }
 0x1e0   :  { %467 = vsyncpa [#allocation4], 1 }

</bundles_post_ra>
